<compile_context>
chip_gen: v7x
topology: tpu7x:2x2x1
jax: 0.10.0
libtpu: 0.0.40
codegen_flags: <defaults>
</compile_context>

<pallas_src>
import jax
import jax.numpy as jnp
from jax import lax
from jax.experimental import pallas as pl
from jax.experimental.pallas import tpu as pltpu

BN_EPS = 1e-5


def buffer_model2_kernel(x_ref, w_ref, o_ref):
    # x: (B, in) f32, w: (out, in) f32 (PyTorch fc.weight layout), o: (B, out)
    x = x_ref[...]
    w = w_ref[...]

    # fc (bias dropped — cancels under batch-mean subtraction):
    # contract x dim 1 with w dim 1 -> (B, out); MXU takes the transposed RHS
    # directly, no in-kernel transpose.
    h = lax.dot_general(
        x, w,
        dimension_numbers=(((1,), (1,)), ((), ())),
        preferred_element_type=jnp.float32,
    )

    # BatchNorm1d (training mode, affine=False), single-pass statistics.
    inv_n = 1.0 / h.shape[0]
    s1 = jnp.sum(h, axis=0, keepdims=True)        # (1, out)  XLU reduce
    s2 = jnp.sum(h * h, axis=0, keepdims=True)    # (1, out)  XLU reduce
    mean = s1 * inv_n
    var = s2 * inv_n - mean * mean                # biased variance
    inv = lax.rsqrt(var + BN_EPS)                 # EUP rsqrt

    o_ref[...] = ((h - mean) * inv).astype(o_ref.dtype)


def buffer_model2(x, w, b=None):
    """Fused Linear + training-mode BatchNorm1d forward.

    x: (B, 10) input; w: PyTorch-style fc.weight (out, in) = (10, 10);
    b: fc.bias (10,) — accepted for API parity but NOT passed to the kernel:
    with affine=False BN, a constant per-feature bias cancels exactly in the
    normalized output (it would only affect running_mean, which this kernel
    does not update).
    """
    del b  # mathematically dead for the returned output
    B, _ = x.shape
    out_f = w.shape[0]
    vmem = pl.BlockSpec(memory_space=pltpu.MemorySpace.VMEM)
    return pl.pallas_call(
        buffer_model2_kernel,
        out_shape=jax.ShapeDtypeStruct((B, out_f), jnp.float32),
        in_specs=[vmem, vmem],
        out_specs=vmem,
    )(x, w)


if __name__ == "__main__":
    key = jax.random.PRNGKey(0)
    kx, kw, kb = jax.random.split(key, 3)

    B, F = 8, 10                          # INPUT_DIM = (10,)
    x = jax.random.normal(kx, (B, F), dtype=jnp.float32)
    # Deterministic fc parameters (PyTorch layout: weight (out, in), bias (out,)).
    w = jax.random.normal(kw, (F, F), dtype=jnp.float32) * 0.1
    b = jax.random.normal(kb, (F,), dtype=jnp.float32) * 0.1

    out = jax.block_until_ready(buffer_model2(x, w, b))

    # Pure-JAX reference of the FULL forward pass (bias included, two-pass BN)
    # — proves the bias-drop and single-pass variance are output-equivalent.
    h = x @ w.T + b
    mean = h.mean(axis=0, keepdims=True)
    var = ((h - mean) ** 2).mean(axis=0, keepdims=True)
    ref = (h - mean) / jnp.sqrt(var + BN_EPS)

    assert out.shape == (B, F)
    assert jnp.allclose(out, ref, atol=1e-4, rtol=1e-4), (out, ref)

    print("KERNEL_OK")
</pallas_src>

<mosaic_0001>
module attributes {stable_mosaic.version = 11 : i64} {
  func.func @buffer_model2_kernel(%arg0: memref<8x10xf32, #tpu.memory_space<vmem>>, %arg1: memref<10x10xf32, #tpu.memory_space<vmem>>, %arg2: memref<8x10xf32, #tpu.memory_space<vmem>>) attributes {dimension_semantics = [], scalar_prefetch = 0 : i64, scratch_operands = 0 : i64, tpu.core_type = #tpu.core_type<tc>} {
    %c0 = arith.constant 0 : index
    %c0_0 = arith.constant 0 : index
    %0 = vector.load %arg0[%c0, %c0_0] : memref<8x10xf32, #tpu.memory_space<vmem>>, vector<8x10xf32>
    %c0_1 = arith.constant 0 : index
    %c0_2 = arith.constant 0 : index
    %1 = vector.load %arg1[%c0_1, %c0_2] : memref<10x10xf32, #tpu.memory_space<vmem>>, vector<10x10xf32>
    %cst = arith.constant dense<0.000000e+00> : vector<8x10xf32>
    %2 = tpu.matmul %0, %1, %cst {dimension_numbers = #tpu.dot_dimension_numbers<[1], [1], [0], [0], [0, 0, 1, 0], [], []>} : vector<8x10xf32>, vector<10x10xf32>, vector<8x10xf32> -> vector<8x10xf32>
    %cst_3 = arith.constant dense<0.000000e+00> : vector<10xf32>
    %3 = vector.multi_reduction <add>, %2, %cst_3 [0] : vector<8x10xf32> to vector<10xf32>
    %4 = vector.shape_cast %3 : vector<10xf32> to vector<1x10xf32>
    %5 = arith.mulf %2, %2 : vector<8x10xf32>
    %cst_4 = arith.constant dense<0.000000e+00> : vector<10xf32>
    %6 = vector.multi_reduction <add>, %5, %cst_4 [0] : vector<8x10xf32> to vector<10xf32>
    %7 = vector.shape_cast %6 : vector<10xf32> to vector<1x10xf32>
    %cst_5 = arith.constant 1.250000e-01 : f32
    %8 = vector.broadcast %cst_5 : f32 to vector<1x10xf32>
    %9 = arith.mulf %4, %8 : vector<1x10xf32>
    %cst_6 = arith.constant 1.250000e-01 : f32
    %10 = vector.broadcast %cst_6 : f32 to vector<1x10xf32>
    %11 = arith.mulf %7, %10 : vector<1x10xf32>
    %12 = arith.mulf %9, %9 : vector<1x10xf32>
    %13 = arith.subf %11, %12 : vector<1x10xf32>
    %cst_7 = arith.constant 9.99999974E-6 : f32
    %14 = vector.broadcast %cst_7 : f32 to vector<1x10xf32>
    %15 = arith.addf %13, %14 : vector<1x10xf32>
    %16 = math.rsqrt %15 : vector<1x10xf32>
    %17 = vector.broadcast %9 : vector<1x10xf32> to vector<8x10xf32>
    %18 = arith.subf %2, %17 : vector<8x10xf32>
    %19 = vector.broadcast %16 : vector<1x10xf32> to vector<8x10xf32>
    %20 = arith.mulf %18, %19 : vector<8x10xf32>
    %c0_8 = arith.constant 0 : index
    %c0_9 = arith.constant 0 : index
    %21 = vector.load %arg2[%c0_8, %c0_9] : memref<8x10xf32, #tpu.memory_space<vmem>>, vector<8x10xf32>
    tpu.vector_store %arg2[%c0_8, %c0_9], %20 {strides = array<i32>} : memref<8x10xf32, #tpu.memory_space<vmem>>, vector<8x10xf32>,
    return
  }
}

</mosaic_0001>

<bundles_post_ra>
// kernel: tpu_custom_call.1
= control target key start
LH: loop header
LB: loop body
LE: loop exit
PB: predicated region body
PF: predicated region fallthrough
CT: control target
= control target key end

     0   :  { %7 = vsyncpa [#allocation3], 0  ;;  %s332_s0 = inlined_call_operand.hbm [shape: f32[8,10], index: 0, kind: input, shape index: {}]   ;;  %s333_s1 = inlined_call_operand.hbm [shape: f32[10,10], index: 1, kind: input, shape index: {}]   ;;  %s334_s2 = inlined_call_operand.hbm [shape: f32[8,10], index: 2, kind: output, shape index: {}]  }
   0x1   :  { %8 = vsyncpa [#allocation6], 0 }
   0x2   :  { %9 = vsyncpa [#allocation4], 0  ;;  %s260_s9 = smov [#allocation2]   ;;  %s261_s11 = smov [#allocation5]  }
   0x3   :  { %s16_s10 = sshll.u32 %s260_s9, 4  ;;  %s25_s12 = sshll.u32 %s261_s11, 4  ;;  %s17_s10 = int_to_ptr.vmem [resolvable:$true] %s16_s10  ;;  %s283_s12 = int_to_ptr.vmem [resolvable:$true] %s25_s12 }
   0x4   :  { %s188_s15 = scalar_lea.hbm %s332_s0, 128 }
   0x5   :  { %p189_p0 = scmp.ne.s32.totalorder %s332_s0, %s188_s15  ;;  %p192_p1 = scmp.lt.u32.totalorder %s188_s15, %s332_s0 }
   0x7   :  { %p194_p2 = pnand %p192_p1, %p189_p0 }
   0x9   :  { %197 = shalt.err (!%p194_p2)
}
   0xa   :  { %s198_s20 = scalar_lea.vmem %s17_s10, 128  ;;  %p203_p4 = scmp.lt.s32.totalorder %s17_s10, %s17_s10 }
   0xb   :  { %p199_p3 = scmp.ne.s32.totalorder %s17_s10, %s198_s20  ;;  %p204_p5 = scmp.lt.s32.totalorder %s198_s20, %s198_s20 }
   0xd   :  { %p205_p6 = por %p204_p5, %p203_p4 }
   0xf   :  { %p206_p7 = pnand %p205_p6, %p199_p3 }
  0x11   :  { %209 = shalt.err (!%p206_p7)
}
  0x12   :  { %19 = dma.hbm_to_vmem [thread:$0]  %s332_s0, 128, %s17_s10, [#allocation3]  }
  0x13   :  { %s210_s25 = scalar_lea.hbm %s333_s1, 256 }
  0x14   :  { %p211_p8 = scmp.ne.s32.totalorder %s333_s1, %s210_s25  ;;  %p214_p9 = scmp.lt.u32.totalorder %s210_s25, %s333_s1 }
  0x16   :  { %p216_p10 = pnand %p214_p9, %p211_p8 }
  0x18   :  { %219 = shalt.err (!%p216_p10)
}
  0x19   :  { %s220_s30 = scalar_lea.vmem %s283_s12, 256  ;;  %p225_p12 = scmp.lt.s32.totalorder %s283_s12, %s283_s12 }
  0x1a   :  { %p221_p11 = scmp.ne.s32.totalorder %s283_s12, %s220_s30  ;;  %p226_p13 = scmp.lt.s32.totalorder %s220_s30, %s220_s30 }
  0x1c   :  { %p227_p0 = por %p226_p13, %p225_p12 }
  0x1e   :  { %p228_p1 = pnand %p227_p0, %p221_p11 }
  0x20   :  { %231 = shalt.err (!%p228_p1)
}
  0x21   :  { %s262_s0 = smov 128   ;;  %s263_s3 = smov 8  }
  0x22   :  { %31 = dma.hbm_to_vmem [thread:$0]  %s333_s1, 256, %s283_s12, [#allocation6], %s262_s0, %s262_s0, %s263_s3  }
  0x23   :  { %254 = dma.done.wait [#allocation3], 128  }
  0x24   :  { %255 = vsyncadd [#allocation3], 4294967168 }
  0x25   :  { %256 = dma.done.wait [#allocation6], 256  }
  0x26   :  { %257 = vsyncadd [#allocation6], 4294967040  ;;  %v264_v0 = vmov 0.0|0.0   ;;  %vm265_vm0 = vmmov 0   ;;  %v266_v1 = vmov 0.0   ;;  %vm41_vm1 = vcmask 80896  }
  0x27   :  { %174 = vmatprep.subr.bf16.mxu0 %v264_v0  ;;  %171 = vmatprep.mubr.msk.f32.mxu0 %vm265_vm0, %v266_v1  ;;  %v39_v2 = vld [vmem:[#allocation5] sm:$0xff]  ;;  %v40_v3 = vld [vmem:[#allocation5 + $0x8] sm:$0x3]  ;;  %vm176_vm2 = vmpackc.low %vm41_vm1, %vm41_vm1  ;;  %s267_s1 = smov [#allocation7]  }
  0x28   :  { %v175_v4 = vpack.c.bf16 %v40_v3, %v39_v2  ;;  %v38_v5 = vld [vmem:[#allocation2] sm:$0xff]  ;;  %s151_s6 = sshll.u32 %s267_s1, 4  ;;  %s152_s6 = int_to_ptr.vmem [resolvable:$true] %s151_s6 }
  0x29   :  { %s232_s7 = scalar_lea.vmem %s152_s6, 128  ;;  %p237_p3 = scmp.lt.s32.totalorder %s152_s6, %s152_s6 }
  0x2a   :  { %177 = vmatpush3.bf16.xpose.msk.msra.mxu0 %vm176_vm2, %v175_v4  ;;  %p233_p2 = scmp.ne.s32.totalorder %s152_s6, %s232_s7  ;;  %p238_p4 = scmp.lt.s32.totalorder %s232_s7, %s232_s7 }
  0x2c   :  { %p239_p5 = por %p238_p4, %p237_p3 }
  0x2e   :  { %p240_p6 = pnand %p239_p5, %p233_p2 }
  0x31   :  { %172 = vmatmul.mubr.msk.f32.vlgmr.msra.gmra.mrb[0].mxu0 %vm41_vm1, %v38_v5 }
 0x104   :  { %v117_v6 = vpop.f32.mrb[0].mxu0 }
 0x105   :  { %v121_v7 = vsel %vm41_vm1, %v117_v6, 0.0  ;;  %v128_v8 = vmul.f32 %v117_v6, %v117_v6  ;;  %v173_v9 = vpop.f32.mrb[1].mxu0 }
 0x106   :  { %v122_v10 = vrot.slane %v121_v7, 4 }
 0x107   :  { %v129_v11 = vsel %vm41_vm1, %v128_v8, 0.0 }
 0x108   :  { %v123_v12 = vadd.f32 %v122_v10, %v121_v7  ;;  %v130_v13 = vrot.slane %v129_v11, 4 }
 0x10a   :  { %v124_v14 = vrot.slane %v123_v12, 2  ;;  %v131_v15 = vadd.f32 %v130_v13, %v129_v11 }
 0x10c   :  { %v125_v16 = vadd.f32 %v124_v14, %v123_v12  ;;  %v132_v17 = vrot.slane %v131_v15, 2 }
 0x10e   :  { %v126_v18 = vrot.slane %v125_v16, 1  ;;  %v133_v19 = vadd.f32 %v132_v17, %v131_v15 }
 0x110   :  { %v127_v20 = vadd.f32 %v126_v18, %v125_v16  ;;  %v134_v21 = vrot.slane %v133_v19, 1 }
 0x112   :  { %v135_v22 = vadd.f32 %v134_v21, %v133_v19  ;;  %v136_v23 = vmul.f32 0.125, %v127_v20 }
 0x114   :  { %v137_v24 = vmul.f32 0.125, %v135_v22  ;;  %v138_v25 = vmul.f32 %v136_v23, %v136_v23  ;;  %v142_v28 = vsub.f32 %v117_v6, %v136_v23 }
 0x116   :  { %v139_v26 = vsub.f32 %v137_v24, %v138_v25 }
 0x118   :  { %v140_v27 = vadd.f32 1e-05, %v139_v26 }
 0x11a   :  { %186 = vrsqrt.f32 %v140_v27 }
 0x124   :  { %v187_v29 = vpop.eup %186 }
 0x125   :  { %v143_v30 = vmul.f32 %v187_v29, %v142_v28 }
 0x127   :  { %144 = vst.msk [vmem:[#allocation7] sm:$0xff] %vm41_vm1, %v143_v30 }
 0x128   :  { %243 = shalt.err (!%p240_p6)
}
 0x129   :  { %s244_s10 = scalar_lea.hbm %s334_s2, 128 }
 0x12a   :  { %p245_p7 = scmp.ne.s32.totalorder %s334_s2, %s244_s10  ;;  %p248_p8 = scmp.lt.u32.totalorder %s244_s10, %s334_s2 }
 0x12c   :  { %p250_p9 = pnand %p248_p8, %p245_p7 }
 0x12e   :  { %253 = shalt.err (!%p250_p9)
}
 0x12f   :  { %154 = dma.vmem_to_hbm [thread:$0]  %s152_s6, 128, %s334_s2, [#allocation4]  }
 0x130   :  { %258 = dma.done.wait [#allocation4], 128  }
 0x131   :  { %259 = vsyncadd [#allocation4], 4294967168 }
 0x132   :  { %158 = vsyncpa [#allocation3], 1 }
 0x133   :  { %159 = vsyncpa [#allocation6], 1 }
 0x134   :  { %160 = vsyncpa [#allocation4], 1 }

</bundles_post_ra>
